<compile_context>
chip_gen: v7x
topology: tpu7x:2x2x1
jax: 0.10.0
libtpu: 0.0.40
codegen_flags: <defaults>
</compile_context>

<pallas_src>
import math

import jax
import jax.numpy as jnp
from jax.experimental import pallas as pl
from jax.experimental.pallas import tpu as pltpu

TIME_PROJ_DIM = 256  # diffusers Timesteps(num_channels=256, flip_sin_to_cos=True, shift=1)


def _silu(v):
    return v * jax.nn.sigmoid(v)


def timestep_proj(timesteps, dim=TIME_PROJ_DIM, max_period=10000.0, downscale_freq_shift=1.0):
    """Sinusoidal timestep embedding, flip_sin_to_cos=True -> [cos, sin]."""
    half = dim // 2
    exponent = -math.log(max_period) * jnp.arange(half, dtype=jnp.float32) / (half - downscale_freq_shift)
    freqs = jnp.exp(exponent)
    args = timesteps.astype(jnp.float32)[:, None] * freqs[None, :]
    return jnp.concatenate([jnp.cos(args), jnp.sin(args)], axis=-1)


# --------------------------------------------------------------------------- #
# Kernel 1: adaLN projection  SiLU(cond) @ W[:, c*D:(c+1)*D] + b_c per chunk c #
#   - weights / cond streamed in bf16 (weight-bandwidth bound), f32 accumulate #
# --------------------------------------------------------------------------- #
def ada_proj_kernel(cond_ref, w_ref, b_ref, emb_ref):
    # cond_ref: (B, D) bf16   w_ref: (1, D, D) bf16   b_ref: (1, 1, D) f32
    # emb_ref:  (1, B, D) f32
    y = jnp.dot(cond_ref[...], w_ref[0], preferred_element_type=jnp.float32)  # (B, D) f32
    emb_ref[0] = y + b_ref[0]


# --------------------------------------------------------------------------- #
# Kernel 2 (hot path): LayerNorm(no affine, eps=1e-6) + adaLN-Zero modulation #
# --------------------------------------------------------------------------- #
def ln_mod_kernel(x_ref, shift_ref, scale_ref, o_ref):
    # x_ref/o_ref: (1, TILE_S, D)   shift_ref/scale_ref: (1, 1, D)
    x = x_ref[...].astype(jnp.float32)
    mean = jnp.mean(x, axis=-1, keepdims=True)
    xc = x - mean                                                   # reused (VALU trim)
    var = jnp.mean(xc * xc, axis=-1, keepdims=True)
    x_hat = xc * jax.lax.rsqrt(var + 1e-6)
    scale1 = 1.0 + scale_ref[...].astype(jnp.float32)
    shift = shift_ref[...].astype(jnp.float32)
    o_ref[...] = (x_hat * scale1 + shift).astype(o_ref.dtype)


def _pick_tile_s(S, D, itemsize, budget_bytes=24 << 20):
    """Pick a seq tile: fits the VMEM budget, multiple of 8, ideally divides S."""
    # 2 input + 2 output double-buffers (itemsize each) + ~2 f32 intermediates per row.
    bytes_per_row = (4 * itemsize + 8) * D
    cap = int(budget_bytes // max(bytes_per_row, 1))
    cap = min(cap, 1024)
    if cap < 8:
        cap = 8
    if S <= cap:
        return S
    # Prefer a divisor of S (multiple of 8) -> lane-dense, unmasked tail-free stores.
    t = cap - (cap % 8)
    while t >= 8:
        if S % t == 0:
            return t
        t -= 8
    return max(8, cap - (cap % 8))


def my_ada_layer_norm_zero(x, timestep, class_labels, params):
    B, S, D = x.shape

    # ---- conditioning path (only B rows; plain JAX) --------------------------
    tproj = timestep_proj(timestep)                                # (B, 256)
    h = _silu(tproj @ params["w1"] + params["b1"])
    t_emb = h @ params["w2"] + params["b2"]
    cond = t_emb + params["class_emb_table"][class_labels]         # (B, D)
    cond_act = _silu(cond).astype(jnp.bfloat16)                    # stream bf16 into MXU

    # ---- adaLN projection: Linear(D -> 8D), tiled over the 8 output chunks ---
    w8, b8 = params["w8"], params["b8"]                            # (8, D, D) bf16, (8, 1, D) f32
    ada_vmem = (2 * D * D * 2            # double-buffered bf16 weight block
                + 2 * D * 4              # bias blocks
                + 2 * B * D * 2          # cond
                + 2 * B * D * 4          # output double buffer
                + (4 << 20))             # headroom
    ada_vmem = int(min(max(ada_vmem, 8 << 20), 48 << 20))
    emb = pl.pallas_call(
        ada_proj_kernel,
        grid=(8,),
        in_specs=[
            pl.BlockSpec((B, D), lambda c: (0, 0)),
            pl.BlockSpec((1, D, D), lambda c: (c, 0, 0)),
            pl.BlockSpec((1, 1, D), lambda c: (c, 0, 0)),
        ],
        out_specs=pl.BlockSpec((1, B, D), lambda c: (c, 0, 0)),
        out_shape=jax.ShapeDtypeStruct((8, B, D), jnp.float32),
        compiler_params=pltpu.CompilerParams(
            dimension_semantics=("parallel",),
            vmem_limit_bytes=ada_vmem,
        ),
        cost_estimate=pl.CostEstimate(
            flops=2 * B * D * 8 * D,
            transcendentals=0,
            bytes_accessed=(8 * D * D * 2 + B * D * 2) + (8 * D + 8 * B * D) * 4,
        ),
    )(cond_act, w8, b8)                                            # (8, B, D), pre-chunked

    shift_msa = emb[0][:, None, :]                                 # (B, 1, D)
    scale_msa = emb[1][:, None, :]                                 # (B, 1, D)

    # ---- hot kernel: tiled, pipelined LayerNorm + modulation over x ----------
    itemsize = jnp.dtype(x.dtype).itemsize
    tile_s = _pick_tile_s(S, D, itemsize)
    n_s = pl.cdiv(S, tile_s)
    # Flat parallel grid -> near-50/50 megacore split on v7x even for B==1/odd B.
    grid = (B * n_s,)
    ln_vmem = (4 * tile_s * D * itemsize   # 2 in + 2 out double buffers
               + 2 * tile_s * D * 4        # f32 intermediates headroom
               + 4 * 2 * D * 4             # shift/scale blocks
               + (4 << 20))
    ln_vmem = int(min(max(ln_vmem, 8 << 20), 48 << 20))
    xout = pl.pallas_call(
        ln_mod_kernel,
        grid=grid,
        in_specs=[
            pl.BlockSpec((1, tile_s, D), lambda t: (t // n_s, t % n_s, 0)),
            pl.BlockSpec((1, 1, D), lambda t: (t // n_s, 0, 0)),
            pl.BlockSpec((1, 1, D), lambda t: (t // n_s, 0, 0)),
        ],
        out_specs=pl.BlockSpec((1, tile_s, D), lambda t: (t // n_s, t % n_s, 0)),
        out_shape=jax.ShapeDtypeStruct((B, S, D), x.dtype),
        compiler_params=pltpu.CompilerParams(
            dimension_semantics=("parallel",),
            vmem_limit_bytes=ln_vmem,
        ),
        cost_estimate=pl.CostEstimate(
            flops=9 * B * S * D,
            transcendentals=B * S,
            bytes_accessed=2 * B * S * D * itemsize + 2 * B * D * 4,
        ),
    )(x, shift_msa, scale_msa)

    gate_msa, shift_mlp, scale_mlp = emb[2], emb[3], emb[4]
    gate_mlp, gate_2, gate_3 = emb[5], emb[6], emb[7]
    return xout, gate_msa, shift_mlp, scale_mlp, gate_mlp, gate_2, gate_3


def reference(x, timestep, class_labels, params):
    """Pure-JAX reference (mirrors the PyTorch module) for correctness checking."""
    D = x.shape[-1]
    tproj = timestep_proj(timestep)
    h = _silu(tproj @ params["w1"] + params["b1"])
    t_emb = h @ params["w2"] + params["b2"]
    cond = t_emb + params["class_emb_table"][class_labels]
    # match the kernel's bf16 streaming of weights / activations (f32 accumulate)
    cond_act = _silu(cond).astype(jnp.bfloat16).astype(jnp.float32)
    w_flat = jnp.transpose(params["w8"].astype(jnp.float32), (1, 0, 2)).reshape(D, 8 * D)
    b_flat = params["b8"].reshape(8 * D)
    emb = cond_act @ w_flat + b_flat
    shift_msa, scale_msa = emb[:, 0:D], emb[:, D:2 * D]
    mean = jnp.mean(x, axis=-1, keepdims=True)
    var = jnp.mean(jnp.square(x - mean), axis=-1, keepdims=True)
    x_hat = (x - mean) * jax.lax.rsqrt(var + 1e-6)
    xout = (x_hat * (1.0 + scale_msa[:, None, :]) + shift_msa[:, None, :]).astype(x.dtype)
    chunks = [emb[:, c * D:(c + 1) * D] for c in range(8)]
    return (xout,) + tuple(chunks[2:])


def init_params(key, embedding_dim, num_embeddings):
    D = embedding_dim
    ks = jax.random.split(key, 7)
    scale = 0.02
    return {
        # TimestepEmbedding: Linear(256, D) -> SiLU -> Linear(D, D)
        "w1": scale * jax.random.normal(ks[0], (TIME_PROJ_DIM, D), jnp.float32),
        "b1": scale * jax.random.normal(ks[1], (D,), jnp.float32),
        "w2": scale * jax.random.normal(ks[2], (D, D), jnp.float32),
        "b2": scale * jax.random.normal(ks[3], (D,), jnp.float32),
        # LabelEmbedding table: (num_classes + 1 cfg row, D)
        "class_emb_table": scale * jax.random.normal(ks[4], (num_embeddings + 1, D), jnp.float32),
        # adaLN-Zero Linear(D, 8D) stored pre-chunked as (8, D, D) in bf16 (the
        # projection kernel is weight-bandwidth bound) and bias (8, 1, D) in f32.
        "w8": (scale * jax.random.normal(ks[5], (8, D, D), jnp.float32)).astype(jnp.bfloat16),
        "b8": scale * jax.random.normal(ks[6], (8, 1, D), jnp.float32),
    }


if __name__ == "__main__":
    B, S, D = 2, 8, 32
    num_classes = 10

    key = jax.random.PRNGKey(0)
    k_x, k_p = jax.random.split(key)
    x = jax.random.normal(k_x, (B, S, D), jnp.float32)
    timestep = jnp.array([3.0, 750.0], jnp.float32)
    class_labels = jnp.array([1, 7], jnp.int32)
    params = init_params(k_p, D, num_classes)

    outs = jax.block_until_ready(my_ada_layer_norm_zero(x, timestep, class_labels, params))

    refs = reference(x, timestep, class_labels, params)
    for o, r in zip(outs, refs):
        assert o.shape == r.shape and o.dtype == r.dtype
        assert jnp.allclose(o, r, rtol=2e-3, atol=2e-3), "mismatch vs reference"

    print("KERNEL_OK")
</pallas_src>

<mosaic_0001>
module attributes {stable_mosaic.version = 11 : i64} {
  func.func @ada_proj_kernel(%arg0: i32, %arg1: memref<2x32xbf16, #tpu.memory_space<vmem>>, %arg2: memref<1x32x32xbf16, #tpu.memory_space<vmem>>, %arg3: memref<1x1x32xf32, #tpu.memory_space<vmem>>, %arg4: memref<1x2x32xf32, #tpu.memory_space<vmem>>) attributes {dimension_semantics = [#tpu.dimension_semantics<parallel>], iteration_bounds = array<i64: 8>, scalar_prefetch = 0 : i64, scratch_operands = 0 : i64, tpu.core_type = #tpu.core_type<tc>, window_params = [{pipeline_mode = #tpu.pipeline_mode<synchronous>, transform_indices = @transform_0, window_bounds = array<i64: 2, 32>}, {transform_indices = @transform_1, window_bounds = array<i64: 1, 32, 32>}, {transform_indices = @transform_2, window_bounds = array<i64: 1, 1, 32>}, {transform_indices = @transform_3, window_bounds = array<i64: 1, 2, 32>}]} {
    %c0 = arith.constant 0 : index
    %c0_0 = arith.constant 0 : index
    %0 = vector.load %arg1[%c0, %c0_0] : memref<2x32xbf16, #tpu.memory_space<vmem>>, vector<2x32xbf16>
    %c0_1 = arith.constant 0 : index
    %c0_2 = arith.constant 0 : index
    %c0_3 = arith.constant 0 : index
    %1 = vector.load %arg2[%c0_1, %c0_2, %c0_3] : memref<1x32x32xbf16, #tpu.memory_space<vmem>>, vector<1x32x32xbf16>
    %2 = vector.shape_cast %1 : vector<1x32x32xbf16> to vector<32x32xbf16>
    %cst = arith.constant dense<0.000000e+00> : vector<2x32xf32>
    %3 = tpu.matmul %0, %2, %cst {dimension_numbers = #tpu.dot_dimension_numbers<[1], [0], [0], [1], [0, 0, 1, 1], [], []>} : vector<2x32xbf16>, vector<32x32xbf16>, vector<2x32xf32> -> vector<2x32xf32>
    %c0_4 = arith.constant 0 : index
    %c0_5 = arith.constant 0 : index
    %c0_6 = arith.constant 0 : index
    %4 = vector.load %arg3[%c0_4, %c0_5, %c0_6] : memref<1x1x32xf32, #tpu.memory_space<vmem>>, vector<1x1x32xf32>
    %5 = vector.shape_cast %4 : vector<1x1x32xf32> to vector<1x32xf32>
    %6 = vector.broadcast %5 : vector<1x32xf32> to vector<2x32xf32>
    %7 = arith.addf %3, %6 : vector<2x32xf32>
    %c0_7 = arith.constant 0 : index
    %c0_8 = arith.constant 0 : index
    %c0_9 = arith.constant 0 : index
    %8 = vector.load %arg4[%c0_7, %c0_8, %c0_9] : memref<1x2x32xf32, #tpu.memory_space<vmem>>, vector<1x2x32xf32>
    %9 = vector.shape_cast %8 : vector<1x2x32xf32> to vector<2x32xf32>
    %10 = vector.shape_cast %7 : vector<2x32xf32> to vector<1x2x32xf32>
    tpu.vector_store %arg4[%c0_7, %c0_8, %c0_9], %10 {strides = array<i32>} : memref<1x2x32xf32, #tpu.memory_space<vmem>>, vector<1x2x32xf32>,
    return
  }
  func.func @transform_0(%arg0: i32) -> (i32, i32) {
    %c0_i32 = arith.constant 0 : i32
    %c0_i32_0 = arith.constant 0 : i32
    %c0_i32_1 = arith.constant 0 : i32
    return %c0_i32, %c0_i32_0 : i32, i32
  }
  func.func @transform_1(%arg0: i32) -> (i32, i32, i32) {
    %c0_i32 = arith.constant 0 : i32
    %c0_i32_0 = arith.constant 0 : i32
    %c0_i32_1 = arith.constant 0 : i32
    return %arg0, %c0_i32, %c0_i32_0 : i32, i32, i32
  }
  func.func @transform_2(%arg0: i32) -> (i32, i32, i32) {
    %c0_i32 = arith.constant 0 : i32
    %c0_i32_0 = arith.constant 0 : i32
    %c0_i32_1 = arith.constant 0 : i32
    return %arg0, %c0_i32, %c0_i32_0 : i32, i32, i32
  }
  func.func @transform_3(%arg0: i32) -> (i32, i32, i32) {
    %c0_i32 = arith.constant 0 : i32
    %c0_i32_0 = arith.constant 0 : i32
    %c0_i32_1 = arith.constant 0 : i32
    return %arg0, %c0_i32, %c0_i32_0 : i32, i32, i32
  }
}

</mosaic_0001>

<bundles_post_ra>
// kernel: tpu_custom_call.1
= control target key start
LH: loop header
LB: loop body
LE: loop exit
PB: predicated region body
PF: predicated region fallthrough
CT: control target
= control target key end

     0   :  { %8 = vsyncpa [#allocation3], 0  ;;  %s940_s0 = inlined_call_operand.hbm [shape: bf16[2,32], index: 0, kind: input, shape index: {}]   ;;  %s941_s1 = inlined_call_operand.hbm [shape: bf16[8,32,32], index: 1, kind: input, shape index: {}]   ;;  %s942_s2 = inlined_call_operand.hbm [shape: f32[8,1,32], index: 2, kind: input, shape index: {}]   ;;  %s943_s3 = inlined_call_operand.hbm [shape: f32[8,2,32], index: 3, kind: output, shape index: {}]  }
   0x1   :  { %9 = vsyncpa [#allocation6], 0 }
   0x2   :  { %11 = vsyncpa [#allocation6 + $0x1], 0 }
   0x3   :  { %12 = vsyncpa [#allocation4], 0 }
   0x4   :  { %14 = vsyncpa [#allocation4 + $0x1], 0  ;;  %s705_s12 = smov 0   ;;  %s707_s13 = smov 0  }
   0x5   :  { %s709_s14 = smov 0   ;;  %s711_s15 = smov 0  }
   0x6 LB: > { %s726_s16 = sadd.s32 1, %s675_s15   ;;  %s48_s17 = sadd.s32 1, %s671_s14  ;;  %s675_s15 = sphi %s711_s15, %s965_s15   ;;  %s671_s14 = sphi %s709_s14, %s964_s14   ;;  %s667_s13 = sphi %s707_s13, %s963_s13   ;;  %s663_s12 = sphi %s705_s12, %s962_s12  }
   0x7   : > { %s45_s18 = ssub.s32 %s675_s15, %s726_s16  ;;  %p55_p0 = scmp.ne.s32.totalorder %s671_s14, %s667_s13 }
   0x8   : > { %p46_p1 = scmp.eq.s32.totalorder %s45_s18, 0  ;;  %p56_p2 = scmp.eq.s32.totalorder %s675_s15, 0 }
   0x9   : > { %p475_p3 = scmp.lt.s32.totalorder %s675_s15, 8  ;;  %s148_s20 = sand.u32 1, %s675_s15  }
   0xa   : > { %s736_s19 = scalar_select %p46_p1, %s671_s14, %s48_s17  }
   0xb   : > { %p57_p4 = por %p56_p2, %p55_p0  ;;  %s150_s21 = sand.u32 1, %s671_s14  }
   0xc   : > { %s421_s22 = sshll.u32 %s150_s21, 4  ;;  %s437_s23 = sshll.u32 %s675_s15, 8 }
   0xd   : > { %s749_s26 = scalar_lea.hbm %s941_s1, %s437_s23  ;;  %s152_s27 = scalar_lea.vmem [#allocation5], %s421_s22 }
   0xe   : > { %s159_s28 = sshll.u32 %s152_s27, 4  ;;  %p751_p5 = pnand %p475_p3, %p57_p4  ;;  %s755_s28 = int_to_ptr.vmem [resolvable:$true] %s159_s28 }
   0xf   : > { %s757_s30 = scalar_lea.sflag [#allocation6], %s148_s20  ;;  %s517_s4 = scalar_lea.hbm %s749_s26, 256 }
  0x10   : > { %p518_p6 = scmp.ne.s32.totalorder %s749_s26, %s517_s4  ;;  %p519_p7 = pneg %p751_p5 }
  0x11   : > { %s522_s7 = scalar_lea.hbm %s941_s1, 2048  ;;  %p523_p10 = scmp.lt.u32.totalorder %s749_s26, %s941_s1 }
  0x12   : > { %p520_p8 = pnand %p519_p7, %p518_p6  ;;  %p524_p11 = scmp.lt.u32.totalorder %s522_s7, %s517_s4 }
  0x13   : > { %p526_p13 = scmp.lt.u32.totalorder %s517_s4, %s749_s26 }
  0x14   : > { %p521_p9 = pneg %p520_p8  ;;  %p525_p12 = por %p524_p11, %p523_p10 }
  0x16   : > { %p527_p1 = por %p526_p13, %p525_p12 }
  0x18   : > { %p528_p2 = pnand %p527_p1, %p521_p9 }
  0x1a   : > { %531 = shalt.err (!%p528_p2)
}
  0x1b   : > { %s532_s10 = scalar_lea.vmem %s755_s28, 256  ;;  %s677_s11 = smov [#allocation5]  }
  0x1c   : > { %p533_p3 = scmp.ne.s32.totalorder %s755_s28, %s532_s10  ;;  %s537_s17 = sshll.u32 %s677_s11, 4  ;;  %s538_s17 = int_to_ptr.vmem [resolvable:$false] %s537_s17 }
  0x1d   : > { %s539_s18 = scalar_lea.vmem %s538_s17, 512  ;;  %p540_p8 = scmp.lt.s32.totalorder %s755_s28, %s538_s17 }
  0x1e   : > { %p535_p4 = pnand %p533_p3, %p519_p7  ;;  %p541_p10 = scmp.lt.s32.totalorder %s539_s18, %s532_s10 }
  0x20   : > { %p536_p6 = pneg %p535_p4  ;;  %p542_p11 = por %p541_p10, %p540_p8 }
  0x22   : > { %p543_p12 = pnand %p542_p11, %p536_p6 }
  0x24   : > { %546 = shalt.err (!%p543_p12)
}
  0x25   : > { %s678_s20 = smov 64   ;;  %s679_s22 = smov 4  }
  0x26   : > { %466 = dma.hbm_to_vmem [thread:$0]  (!%p751_p5), %s749_s26, 256, %s755_s28, %s757_s30, %s678_s20, %s678_s20, %s679_s22  }
  0x27   : > { %s786_s23 = sadd.s32 4294967295, %s675_s15   ;;  %s417_s24 = sadd.s32 4294967294, %s675_s15  }
  0x28   : > { %p61_p9 = scmp.ne.s32.totalorder %s667_s13, %s663_s12  ;;  %p944_p13 = scmp.eq.s32.totalorder %s786_s23, 0 }
  0x29   : > { %p111_p1 = scmp.eq.s32.totalorder %s786_s23, 7  ;;  %p117_p2 = scmp.eq.s32.totalorder %s417_s24, 7 }
  0x2a   : > { %p795_p3 = por %p944_p13, %p61_p9  ;;  %p418_p4 = scmp.ge.s32.totalorder %s675_s15, 1 }
  0x2b   : > { %p803_p6 = por %p111_p1, %p55_p0  ;;  %p807_p8 = por %p117_p2, %p61_p9 }
  0x2c   : > { %s950_s25 = scalar_select %p795_p3, 1, 0 }
  0x2d   : > { %s951_s26 = scalar_select %p803_p6, 1, 0 }
  0x2e   : > { %s952_s27 = scalar_select %p807_p8, 1, 0 }
  0x2f   : > { %p124_p10 = scmp.lt.s32.totalorder %s675_s15, 9  ;;  %s680_s4 = smov [#allocation2]  }
  0x30   : > { %s137_s5 = sshll.u32 %s680_s4, 4  ;;  %s424_s6 = sshll.u32 %s675_s15, 4  ;;  %s824_s5 = int_to_ptr.vmem [resolvable:$true] %s137_s5 }
  0x31   : > { %p812_p11 = pnand %p418_p4, %p124_p10  ;;  %s822_s9 = scalar_lea.hbm %s942_s2, %s424_s6 }
  0x32   : > { %s172_s10 = scalar_lea.vmem [#allocation7], %s150_s21  ;;  %s547_s18 = scalar_lea.hbm %s822_s9, 16 }
  0x33   : > { %s953_s28 = scalar_select %p812_p11, 1, 0 }
  0x34   : > { %p459_p12 = pneg %p812_p11  ;;  %s179_s11 = sshll.u32 %s172_s10, 4  ;;  %s180_s11 = int_to_ptr.vmem [resolvable:$true] %s179_s11 }
  0x35   : > { %p548_p9 = scmp.ne.s32.totalorder %s822_s9, %s547_s18  ;;  %s552_s24 = scalar_lea.hbm %s942_s2, 128 }
  0x36   : > { %p830_p0 = pnand %p459_p12, %p944_p13  ;;  %p553_p4 = scmp.lt.u32.totalorder %s822_s9, %s942_s2 }
  0x37   : > { %p550_p1 = pnand %p548_p9, %p519_p7  ;;  %p554_p10 = scmp.lt.u32.totalorder %s552_s24, %s547_s18 }
  0x38   : > { %s954_s17 = scalar_select %p830_p0, 1, 0 }
  0x39   : > { %p551_p2 = pneg %p550_p1  ;;  %p555_p12 = por %p554_p10, %p553_p4 }
  0x3a   : > { %p556_p13 = scmp.lt.u32.totalorder %s547_s18, %s822_s9 }
  0x3c   : > { %p557_p8 = por %p556_p13, %p555_p12 }
  0x3e   : > { %p558_p6 = pnand %p557_p8, %p551_p2 }
  0x40   : > { %561 = shalt.err (!%p558_p6)
}
  0x41   : > { %s562_s21 = scalar_lea.vmem %s180_s11, 16  ;;  %s681_s7 = smov [#allocation7]  }
  0x42   : > { %p563_p3 = scmp.ne.s32.totalorder %s180_s11, %s562_s21  ;;  %s567_s8 = sshll.u32 %s681_s7, 4  ;;  %s568_s8 = int_to_ptr.vmem [resolvable:$false] %s567_s8 }
  0x43   : > { %s569_s10 = scalar_lea.vmem %s568_s8, 32  ;;  %p570_p11 = scmp.lt.s32.totalorder %s180_s11, %s568_s8 }
  0x44   : > { %p565_p9 = pnand %p563_p3, %p519_p7  ;;  %p571_p0 = scmp.lt.s32.totalorder %s569_s10, %s562_s21 }
  0x46   : > { %p566_p1 = pneg %p565_p9  ;;  %p572_p4 = por %p571_p0, %p570_p11 }
  0x48   : > { %p573_p10 = pnand %p572_p4, %p566_p1 }
  0x4a   : > { %576 = shalt.err (!%p573_p10)
}
  0x4b   : > { %469 = dma.hbm_to_vmem [thread:$0]  (!%p751_p5), %s822_s9, 16, %s180_s11, %s757_s30  }
  0x4c   : > { %s577_s22 = scalar_lea.hbm %s940_s0, 16  ;;  %p955_p13 = scmp.ne.s32.totalorder %s954_s17, 0 }
  0x4d   : > { %p578_p7 = scmp.ne.s32.totalorder %s940_s0, %s577_s22  ;;  %p584_p11 = scmp.lt.u32.totalorder %s577_s22, %s940_s0 }
  0x4e   : > { %p579_p3 = pneg %p955_p13 }
  0x50   : > { %p580_p6 = pnand %p579_p3, %p578_p7 }
  0x52   : > { %p581_p8 = pneg %p580_p6 }
  0x54   : > { %p586_p0 = pnand %p584_p11, %p581_p8 }
  0x56   : > { %589 = shalt.err (!%p586_p0)
}
  0x57   : > { %s590_s29 = scalar_lea.vmem %s824_s5, 16  ;;  %s597_s30 = scalar_lea.vmem %s824_s5, 32 }
  0x58   : > { %p591_p5 = scmp.ne.s32.totalorder %s824_s5, %s590_s29  ;;  %p598_p9 = scmp.lt.s32.totalorder %s824_s5, %s824_s5 }
  0x59   : > { %p599_p1 = scmp.lt.s32.totalorder %s597_s30, %s590_s29 }
  0x5a   : > { %p593_p2 = pnand %p591_p5, %p579_p3 }
  0x5b   : > { %p600_p4 = por %p599_p1, %p598_p9 }
  0x5c   : > { %p594_p12 = pneg %p593_p2 }
  0x5e   : > { %p601_p10 = pnand %p600_p4, %p594_p12 }
  0x60   : > { %604 = shalt.err (!%p601_p10)
}
  0x61   : > { %462 = dma.hbm_to_vmem [thread:$0]  (!%p955_p13), %s940_s0, 16, %s824_s5, [#allocation3]  }
  0x62   : > { %p956_p7 = scmp.ne.s32.totalorder %s953_s28, 0 }
  0x63   : > { %p957_p3 = scmp.eq.s32.totalorder (!%p956_p7), %s786_s23, 0 }
  0x64   : > { %188 = sbr.rel (%p956_p7) target bundleno = 350 (0x15e), region = 32 }
  0x6b   : > { %650 = dma.done.wait (%p957_p3), [#allocation3], 16   ;;  %p958_p6 = pmov %p957_p3 }
  0x6c   : > { %s194_s7 = sand.u32 1, %s786_s23   ;;  %s884_s8 = sand.u32 1, %s667_s13  }
  0x6d   : > { %652 = vsyncadd (%p958_p6), [#allocation3], 4294967280  ;;  %s427_s17 = sshll.u32 %s884_s8, 4  ;;  %s195_s10 = scalar_lea.sflag [#allocation6], %s194_s7 }
  0x6e   : > { %s198_s18 = scalar_lea.vmem [#allocation5], %s427_s17  ;;  %p959_p13 = scmp.ne.s32.totalorder %s950_s25, 0 }
  0x70   : > { %654 = dma.done.wait (%p959_p13), %s195_s10, 272  }
  0x71   : > { %656 = vsyncadd (%p959_p13), %s195_s10, 4294967024  ;;  %v682_v0 = vmov 0.0   ;;  %vm683_vm0 = vmmov 0   ;;  %v515_v1 = vld [vmem:[%s198_s18] sm:$0xff]   ;;  %v516_v2 = vld [vmem:[%s198_s18 + $0x8] sm:$0xff]   ;;  %vm258_vm1 = vcmask 261120  }
  0x72   : > { %441 = vmatprep.subr.bf16.mxu0 %v682_v0  ;;  %445 = vmatprep.mubr.msk.bf16.mxu0 %vm683_vm0, %v682_v0  ;;  %v234_v3 = vld [vmem:[#allocation2] sm:$0x1]  ;;  %s428_s28 = sshll.u32 %s884_s8, 1  ;;  %s206_s5 = scalar_lea.vmem [#allocation7], %s884_s8  ;;  %vm302_vm2 = vcmask 254976  }
  0x73   : > { %442 = vmatpush3.bf16.msra.mxu0 %v515_v1  ;;  %v429_v4 = vld [vmem:[%s206_s5] ss:$0 sm:$0xff]  ;;  %s434_s25 = sshll.u32 %s786_s23, 5  ;;  %s232_s20 = scalar_lea.vmem [#allocation8], %s428_s28 }
  0x74   : > { %443 = vmatprep.subr.bf16.mxu0 %v682_v0  ;;  %s318_s22 = sshll.u32 %s232_s20, 4  ;;  %s897_s6 = scalar_lea.hbm %s943_s3, %s434_s25  ;;  %s899_s22 = int_to_ptr.vmem [resolvable:$true] %s318_s22 }
  0x75   : > { %s305_s23 = scalar_lea.sflag [#allocation4], %s884_s8  ;;  %s605_s21 = scalar_lea.vmem %s899_s22, 32 }
  0x76   : > { %p606_p8 = scmp.ne.s32.totalorder %s899_s22, %s605_s21  ;;  %p960_p11 = scmp.ne.s32.totalorder %s951_s26, 0 }
  0x77   : > { %444 = vmatpush3.bf16.msra.mxu0 %v516_v2  ;;  %s684_s29 = smov [#allocation8]  }
  0x78   : > { %p607_p0 = pnand %p606_p8, %p960_p11  ;;  %s609_s30 = sshll.u32 %s684_s29, 4  ;;  %s610_s30 = int_to_ptr.vmem [resolvable:$false] %s609_s30 }
  0x79   : > { %s611_s9 = scalar_lea.vmem %s610_s30, 64  ;;  %p612_p2 = scmp.lt.s32.totalorder %s899_s22, %s610_s30 }
  0x7a   : > { %446 = vmatmul.mubr.msk.bf16.vlgmr.msra.gmra.mrb[0].mxu0 %vm258_vm1, %v234_v3  ;;  %p608_p5 = pneg %p607_p0  ;;  %p613_p12 = scmp.lt.s32.totalorder %s611_s9, %s605_s21 }
  0x7c   : > { %p614_p9 = por %p613_p12, %p612_p2 }
  0x7e   : > { %p615_p1 = pnand %p614_p9, %p608_p5 }
 0x14d   : > { %v296_v5 = vpop.f32.mrb[0].mxu0 }
 0x14e   : > { %v297_v6 = vadd.f32 %v429_v4, %v296_v5  ;;  %v447_v7 = vpop.f32.mrb[1].mxu0 }
 0x14f   : > { %v299_v8 = vpop.f32.mrb[2].mxu0 }
 0x150   : > { %v448_v9 = vpop.f32.mrb[3].mxu0  ;;  %303 = vst.msk [vmem:[%s232_s20] sm:$0x3] %vm302_vm2, %v297_v6 }
 0x151   : > { %618 = shalt.err (!%p615_p1)
}
 0x152   : > { %s619_s11 = scalar_lea.hbm %s897_s6, 32  ;;  %s623_s17 = scalar_lea.hbm %s943_s3, 256 }
 0x153   : > { %p620_p4 = scmp.ne.s32.totalorder %s897_s6, %s619_s11  ;;  %p624_p3 = scmp.lt.u32.totalorder %s897_s6, %s943_s3 }
 0x154   : > { %p625_p6 = scmp.lt.u32.totalorder %s623_s17, %s619_s11  ;;  %p627_p8 = scmp.lt.u32.totalorder %s619_s11, %s897_s6 }
 0x155   : > { %p621_p10 = pnand %p620_p4, %p960_p11 }
 0x156   : > { %p626_p13 = por %p625_p6, %p624_p3 }
 0x157   : > { %p622_p7 = pneg %p621_p10 }
 0x158   : > { %p628_p0 = por %p627_p8, %p626_p13 }
 0x15a   : > { %p629_p5 = pnand %p628_p0, %p622_p7 }
 0x15c   : > { %632 = shalt.err (!%p629_p5)
}
 0x15d   : > { %457 = dma.vmem_to_hbm [thread:$0]  (%p960_p11), %s899_s22, 32, %s897_s6, %s305_s23  }
 0x15e PF: > { %p477_p2 = scmp.ge.s32.totalorder %s675_s15, 2  ;;  %s330_s28 = sand.u32 1, %s663_s12  }
 0x15f   : > { %p961_p12 = scmp.ne.s32.totalorder %s952_s27, 0  ;;  %s331_s5 = scalar_lea.sflag [#allocation4], %s330_s28 }
 0x161   : > { %p471_p9 = pnand %p477_p2, %p961_p12 }
 0x163   : > { %658 = dma.done.wait (!%p471_p9), %s331_s5, 32  }
 0x164   : > { %660 = vsyncadd (!%p471_p9), %s331_s5, 4294967264  ;;  %p17_p1 = scmp.ge.s32.totalorder %s726_s16, 10   ;;  %s962_s12 = smov %s667_s13 }
 0x165   : > { %s963_s13 = smov %s671_s14  ;;  %s964_s14 = smov %s736_s19 }
 0x166   : > { %s965_s15 = smov %s726_s16  ;;  %19 = sbr.rel (!%p17_p1) target bundleno = 6 (0x6), region = 93 }
 0x16d   :  { %336 = vsyncpa [#allocation3], 1 }
 0x16e   :  { %338 = vsyncpa [#allocation3 + $0x1], 1 }
 0x16f   :  { %339 = vsyncpa [#allocation6], 1 }
 0x170   :  { %341 = vsyncpa [#allocation6 + $0x1], 1 }
 0x171   :  { %342 = vsyncpa [#allocation4], 1 }
 0x172   :  { %344 = vsyncpa [#allocation4 + $0x1], 1 }

</bundles_post_ra>
